<compile_context>
chip_gen: v6e
topology: v6e:2x2x1
jax: 0.10.0
libtpu: 0.0.40
codegen_flags: <defaults>
</compile_context>

<pallas_src>
import jax
import jax.numpy as jnp
from jax.experimental import pallas as pl
from jax.experimental.pallas import tpu as pltpu


# -----------------------------------------------------------------------------
# helpers
# -----------------------------------------------------------------------------
def _round_up(x, m):
    return (x + m - 1) // m * m


def _pad_rows(x, r_pad):
    r = x.shape[0]
    if r == r_pad:
        return x
    return jnp.pad(x, ((0, r_pad - r), (0, 0)))


# -----------------------------------------------------------------------------
# Kernel 1: fused avg + dual "PLM" matmul (dense + tanh surrogate)
# -----------------------------------------------------------------------------
def _plm_fused_kernel(issue_ref, share_ref, w_ref, b_ref, avg_out_ref, share_out_ref):
    issue = issue_ref[...]                                # (tm, K) f32
    share = share_ref[...]                                # (tm, K) f32
    # avg is pure VPU filler under the MXU-bound matmul (fused, no HBM trip)
    avg_x = ((issue + share) * jnp.float32(0.5)).astype(jnp.bfloat16)
    # ReverseLayerF(share, alpha) is identity in the forward pass
    share_x = share.astype(jnp.bfloat16)
    w = w_ref[...]                                        # (K, N) bf16
    b = b_ref[...]                                        # (1, N) f32
    h_avg = jnp.dot(avg_x, w, preferred_element_type=jnp.float32) + b
    h_share = jnp.dot(share_x, w, preferred_element_type=jnp.float32) + b
    # bias add + tanh stay in f32 (safe on v5e which has no bf16 VPU/EUP path)
    avg_out_ref[...] = jnp.tanh(h_avg)
    share_out_ref[...] = jnp.tanh(h_share)


def pallas_plm_fused(issue, share, w, b, *, tm_max=256):
    """Returns (tanh((issue+share)/2 @ w + b), tanh(share @ w + b))."""
    R, K = issue.shape
    K2, N = w.shape
    assert K == K2 and share.shape == (R, K)

    tm = min(tm_max, _round_up(R, 8))
    r_pad = _round_up(R, tm)
    issue_p = _pad_rows(issue.astype(jnp.float32), r_pad)
    share_p = _pad_rows(share.astype(jnp.float32), r_pad)
    w_bf = w.astype(jnp.bfloat16)
    b_f = b.astype(jnp.float32).reshape(1, N)

    grid = (r_pad // tm,)
    flops = 2 * (2 * r_pad * K * N)                      # two matmuls
    bytes_accessed = (2 * r_pad * K * 4 + K * N * 2 + N * 4 + 2 * r_pad * N * 4)

    avg_h, share_h = pl.pallas_call(
        _plm_fused_kernel,
        out_shape=(
            jax.ShapeDtypeStruct((r_pad, N), jnp.float32),
            jax.ShapeDtypeStruct((r_pad, N), jnp.float32),
        ),
        grid=grid,
        in_specs=[
            pl.BlockSpec((tm, K), lambda i: (i, 0)),
            pl.BlockSpec((tm, K), lambda i: (i, 0)),
            pl.BlockSpec((K, N), lambda i: (0, 0)),
            pl.BlockSpec((1, N), lambda i: (0, 0)),
        ],
        out_specs=(
            pl.BlockSpec((tm, N), lambda i: (i, 0)),
            pl.BlockSpec((tm, N), lambda i: (i, 0)),
        ),
        compiler_params=pltpu.CompilerParams(
            dimension_semantics=("parallel",),           # shard row tiles across TCs (v7x)
        ),
        cost_estimate=pl.CostEstimate(
            flops=flops,
            transcendentals=2 * r_pad * N,
            bytes_accessed=bytes_accessed,
        ),
    )(issue_p, share_p, w_bf, b_f)
    return avg_h[:R], share_h[:R]


# -----------------------------------------------------------------------------
# Kernel 2: fused classification heads (lane-dense padded output)
# -----------------------------------------------------------------------------
def _head_kernel(x_ref, w_ref, b_ref, o_ref):
    x = x_ref[...].astype(jnp.bfloat16)
    y = jnp.dot(x, w_ref[...], preferred_element_type=jnp.float32) + b_ref[...]
    o_ref[...] = y


def pallas_heads(x, w, b, *, tm_max=256):
    """y = x @ w + b with lane-dense (128-multiple) N.  x:(R,K), w:(K,N), b:(1,N)."""
    R, K = x.shape
    K2, N = w.shape
    assert K == K2 and N % 128 == 0 and b.shape == (1, N)

    tm = min(tm_max, _round_up(R, 8))
    r_pad = _round_up(R, tm)
    x_p = _pad_rows(x.astype(jnp.float32), r_pad)
    w_bf = w.astype(jnp.bfloat16)
    b_f = b.astype(jnp.float32)

    grid = (r_pad // tm,)
    out = pl.pallas_call(
        _head_kernel,
        out_shape=jax.ShapeDtypeStruct((r_pad, N), jnp.float32),
        grid=grid,
        in_specs=[
            pl.BlockSpec((tm, K), lambda i: (i, 0)),
            pl.BlockSpec((K, N), lambda i: (0, 0)),
            pl.BlockSpec((1, N), lambda i: (0, 0)),
        ],
        out_specs=pl.BlockSpec((tm, N), lambda i: (i, 0)),
        compiler_params=pltpu.CompilerParams(
            dimension_semantics=("parallel",),
        ),
        cost_estimate=pl.CostEstimate(
            flops=2 * r_pad * K * N,
            transcendentals=0,
            bytes_accessed=r_pad * K * 4 + K * N * 2 + N * 4 + r_pad * N * 4,
        ),
    )(x_p, w_bf, b_f)
    return out[:R]


# -----------------------------------------------------------------------------
# Parameters (deterministic, mirrors __init__ shapes + _init_fc_weights)
# -----------------------------------------------------------------------------
def xavier_uniform(key, shape):
    fan_in, fan_out = shape
    bound = (6.0 / (fan_in + fan_out)) ** 0.5
    return jax.random.uniform(key, shape, jnp.float32, -bound, bound)


def init_params(key, hidden_size, pivot_num, num_labels, issue_num):
    k = jax.random.split(key, 4)
    return {
        # TODO(synk): surrogate for the external HuggingFace PLM body (dense+tanh).
        "plm_w": xavier_uniform(k[0], (hidden_size, hidden_size)),
        "plm_b": jnp.zeros((1, hidden_size), jnp.float32),
        # self.pivot_fc = nn.Linear(hidden_size, pivot_num), xavier + zero bias
        "pivot_w": xavier_uniform(k[1], (hidden_size, pivot_num)),
        "pivot_b": jnp.zeros((pivot_num,), jnp.float32),
        # self.issue_fc = nn.Linear(hidden_size, issue_num), xavier + zero bias
        "issue_w": xavier_uniform(k[2], (hidden_size, issue_num)),
        "issue_b": jnp.zeros((issue_num,), jnp.float32),
        # self.label_emb = nn.Embedding(num_labels, hidden_size), default N(0,1)
        "label_emb": jax.random.normal(k[3], (num_labels, hidden_size), jnp.float32),
    }


# -----------------------------------------------------------------------------
# Forward pass (mirrors JointMLMAdvMlPLabelEmb.forward, train=True)
# -----------------------------------------------------------------------------
def joint_forward(params, issue_embeds, share_embeds, loss_ids, alpha, train=True):
    B, L, H = issue_embeds.shape
    R = B * L
    issue_2d = issue_embeds.reshape(R, H)
    share_2d = share_embeds.reshape(R, H)

    # TODO(synk): template_*.process_batch(diff=True) is external; its soft-prompt
    # embeds are the kernel inputs and the diff terms (out1/out2) are the embeds.
    out1 = issue_embeds
    out2 = share_embeds

    # Fused kernel: (issue+share)/2 avg + PLM pass on the avg batch, and PLM pass
    # on the gradient-reversed share batch (ReverseLayerF is identity forward;
    # alpha only scales gradients).
    hidden_avg_2d, hidden_share_2d = pallas_plm_fused(
        issue_2d, share_2d, params["plm_w"], params["plm_b"]
    )
    hidden_avg = hidden_avg_2d.reshape(B, L, H)
    hidden_share = hidden_share_2d.reshape(B, L, H)

    # TODO(synk): template.post_processing_outputs(outputs) is external; identity here.
    # extract_at_mask: one <mask> position per example.
    mask_idx = jnp.argmax(loss_ids, axis=-1)                               # (B,)
    label_at_mask = jnp.take_along_axis(
        hidden_avg, mask_idx[:, None, None], axis=1
    )[:, 0, :]                                                             # (B, H)

    # TODO(synk): plm(**share_batch)[1] is the external PLM's pooled output;
    # surrogate = hidden state at position 0 of the share pass.
    pooled_share = hidden_share[:, 0, :]                                   # (B, H)

    # ---- fused heads: pivot_fc | label_emb.T | issue_fc, padded to 128 lanes ----
    pivot_num = params["pivot_w"].shape[1]
    num_labels = params["label_emb"].shape[0]
    issue_num = params["issue_w"].shape[1]
    n_total = pivot_num + num_labels + issue_num
    n_pad = _round_up(n_total, 128)

    head_w = jnp.concatenate(
        [params["pivot_w"], params["label_emb"].T, params["issue_w"]], axis=1
    )                                                                      # (H, n_total)
    head_w = jnp.pad(head_w, ((0, 0), (0, n_pad - n_total)))
    head_b = jnp.concatenate(
        [params["pivot_b"], jnp.zeros((num_labels,), jnp.float32), params["issue_b"]]
    )
    head_b = jnp.pad(head_b, (0, n_pad - n_total)).reshape(1, n_pad)

    # Rows: all token rows (pivot head) + mask rows (label head) + pooled rows
    # (issue head) so the tiny B-row matmuls ride along with the big one.
    head_x = jnp.concatenate([hidden_avg_2d, label_at_mask, pooled_share], axis=0)
    head_out = pallas_heads(head_x, head_w, head_b)                        # (R+2B, n_pad)

    mlm_logits = head_out[:R, :pivot_num] if train else None              # (B*L, pivot)
    label_words_logits = jax.nn.sigmoid(
        head_out[R:R + B, pivot_num:pivot_num + num_labels]
    )                                                                      # (B, labels)
    issue_logits = head_out[R + B:R + 2 * B,
                            pivot_num + num_labels:n_total]                # (B, issues)

    if train:
        return label_words_logits, issue_logits, mlm_logits, out1, out2
    return label_words_logits, issue_logits, None, out1, out2


# -----------------------------------------------------------------------------
# Main
# -----------------------------------------------------------------------------
if __name__ == "__main__":
    B, L, H = 2, 8, 32
    PIVOT_NUM = 4
    NUM_LABELS = 3
    ISSUE_NUM = 5
    ALPHA = 0.5

    key = jax.random.PRNGKey(0)
    k_param, k_issue, k_share, k_mask = jax.random.split(key, 4)

    params = init_params(k_param, H, PIVOT_NUM, NUM_LABELS, ISSUE_NUM)

    issue_embeds = jax.random.normal(k_issue, (B, L, H), jnp.float32)
    share_embeds = jax.random.normal(k_share, (B, L, H), jnp.float32)

    # one <mask> position per example (loss_ids)
    mask_pos = jax.random.randint(k_mask, (B,), 0, L)
    loss_ids = (jnp.arange(L)[None, :] == mask_pos[:, None]).astype(jnp.int32)

    label_logits, issue_logits, mlm_logits, out1, out2 = joint_forward(
        params, issue_embeds, share_embeds, loss_ids, ALPHA, train=True
    )
    jax.block_until_ready((label_logits, issue_logits, mlm_logits, out1, out2))

    assert label_logits.shape == (B, NUM_LABELS)
    assert issue_logits.shape == (B, ISSUE_NUM)
    assert mlm_logits.shape == (B * L, PIVOT_NUM)
    assert out1.shape == (B, L, H) and out2.shape == (B, L, H)
    print("KERNEL_OK")
</pallas_src>

<mosaic_0001>
module attributes {stable_mosaic.version = 11 : i64} {
  func.func @_plm_fused_kernel(%arg0: i32, %arg1: memref<16x32xf32, #tpu.memory_space<vmem>>, %arg2: memref<16x32xf32, #tpu.memory_space<vmem>>, %arg3: memref<32x32xbf16, #tpu.memory_space<vmem>>, %arg4: memref<1x32xf32, #tpu.memory_space<vmem>>, %arg5: memref<16x32xf32, #tpu.memory_space<vmem>>, %arg6: memref<16x32xf32, #tpu.memory_space<vmem>>) attributes {dimension_semantics = [#tpu.dimension_semantics<parallel>], iteration_bounds = array<i64: 1>, scalar_prefetch = 0 : i64, scratch_operands = 0 : i64, tpu.core_type = #tpu.core_type<tc>, window_params = [{transform_indices = @transform_0, window_bounds = array<i64: 16, 32>}, {transform_indices = @transform_1, window_bounds = array<i64: 16, 32>}, {pipeline_mode = #tpu.pipeline_mode<synchronous>, transform_indices = @transform_2, window_bounds = array<i64: 32, 32>}, {pipeline_mode = #tpu.pipeline_mode<synchronous>, transform_indices = @transform_3, window_bounds = array<i64: 1, 32>}, {transform_indices = @transform_4, window_bounds = array<i64: 16, 32>}, {transform_indices = @transform_5, window_bounds = array<i64: 16, 32>}]} {
    %c0 = arith.constant 0 : index
    %c0_0 = arith.constant 0 : index
    %0 = vector.load %arg1[%c0, %c0_0] : memref<16x32xf32, #tpu.memory_space<vmem>>, vector<16x32xf32>
    %c0_1 = arith.constant 0 : index
    %c0_2 = arith.constant 0 : index
    %1 = vector.load %arg2[%c0_1, %c0_2] : memref<16x32xf32, #tpu.memory_space<vmem>>, vector<16x32xf32>
    %2 = arith.addf %0, %1 : vector<16x32xf32>
    %cst = arith.constant 5.000000e-01 : f32
    %3 = vector.broadcast %cst : f32 to vector<16x32xf32>
    %4 = arith.mulf %2, %3 : vector<16x32xf32>
    %5 = arith.truncf %4 : vector<16x32xf32> to vector<16x32xbf16>
    %6 = arith.truncf %1 : vector<16x32xf32> to vector<16x32xbf16>
    %c0_3 = arith.constant 0 : index
    %c0_4 = arith.constant 0 : index
    %7 = vector.load %arg3[%c0_3, %c0_4] : memref<32x32xbf16, #tpu.memory_space<vmem>>, vector<32x32xbf16>
    %c0_5 = arith.constant 0 : index
    %c0_6 = arith.constant 0 : index
    %8 = vector.load %arg4[%c0_5, %c0_6] : memref<1x32xf32, #tpu.memory_space<vmem>>, vector<1x32xf32>
    %cst_7 = arith.constant dense<0.000000e+00> : vector<16x32xf32>
    %9 = tpu.matmul %5, %7, %cst_7 {dimension_numbers = #tpu.dot_dimension_numbers<[1], [0], [0], [1], [0, 0, 1, 1], [], []>} : vector<16x32xbf16>, vector<32x32xbf16>, vector<16x32xf32> -> vector<16x32xf32>
    %10 = vector.broadcast %8 : vector<1x32xf32> to vector<16x32xf32>
    %11 = arith.addf %9, %10 : vector<16x32xf32>
    %cst_8 = arith.constant dense<0.000000e+00> : vector<16x32xf32>
    %12 = tpu.matmul %6, %7, %cst_8 {dimension_numbers = #tpu.dot_dimension_numbers<[1], [0], [0], [1], [0, 0, 1, 1], [], []>} : vector<16x32xbf16>, vector<32x32xbf16>, vector<16x32xf32> -> vector<16x32xf32>
    %13 = vector.broadcast %8 : vector<1x32xf32> to vector<16x32xf32>
    %14 = arith.addf %12, %13 : vector<16x32xf32>
    %15 = math.tanh %11 : vector<16x32xf32>
    %c0_9 = arith.constant 0 : index
    %c0_10 = arith.constant 0 : index
    %16 = vector.load %arg5[%c0_9, %c0_10] : memref<16x32xf32, #tpu.memory_space<vmem>>, vector<16x32xf32>
    tpu.vector_store %arg5[%c0_9, %c0_10], %15 {strides = array<i32>} : memref<16x32xf32, #tpu.memory_space<vmem>>, vector<16x32xf32>,
    %17 = math.tanh %14 : vector<16x32xf32>
    %c0_11 = arith.constant 0 : index
    %c0_12 = arith.constant 0 : index
    %18 = vector.load %arg6[%c0_11, %c0_12] : memref<16x32xf32, #tpu.memory_space<vmem>>, vector<16x32xf32>
    tpu.vector_store %arg6[%c0_11, %c0_12], %17 {strides = array<i32>} : memref<16x32xf32, #tpu.memory_space<vmem>>, vector<16x32xf32>,
    return
  }
  func.func @transform_0(%arg0: i32) -> (i32, i32) {
    %c0_i32 = arith.constant 0 : i32
    %c0_i32_0 = arith.constant 0 : i32
    return %arg0, %c0_i32 : i32, i32
  }
  func.func @transform_1(%arg0: i32) -> (i32, i32) {
    %c0_i32 = arith.constant 0 : i32
    %c0_i32_0 = arith.constant 0 : i32
    return %arg0, %c0_i32 : i32, i32
  }
  func.func @transform_2(%arg0: i32) -> (i32, i32) {
    %c0_i32 = arith.constant 0 : i32
    %c0_i32_0 = arith.constant 0 : i32
    %c0_i32_1 = arith.constant 0 : i32
    return %c0_i32, %c0_i32_0 : i32, i32
  }
  func.func @transform_3(%arg0: i32) -> (i32, i32) {
    %c0_i32 = arith.constant 0 : i32
    %c0_i32_0 = arith.constant 0 : i32
    %c0_i32_1 = arith.constant 0 : i32
    return %c0_i32, %c0_i32_0 : i32, i32
  }
  func.func @transform_4(%arg0: i32) -> (i32, i32) {
    %c0_i32 = arith.constant 0 : i32
    %c0_i32_0 = arith.constant 0 : i32
    return %arg0, %c0_i32 : i32, i32
  }
  func.func @transform_5(%arg0: i32) -> (i32, i32) {
    %c0_i32 = arith.constant 0 : i32
    %c0_i32_0 = arith.constant 0 : i32
    return %arg0, %c0_i32 : i32, i32
  }
}

</mosaic_0001>

<bundles_post_ra>
// kernel: tpu_custom_call.1
= control target key start
LH: loop header
LB: loop body
LE: loop exit
PB: predicated region body
PF: predicated region fallthrough
CT: control target
= control target key end

     0   :  { %11 = vsyncpa [#allocation3], 0  ;;  %s460_s0 = inlined_call_operand.hbm [shape: f32[16,32], index: 0, kind: input, shape index: {}]   ;;  %s461_s1 = inlined_call_operand.hbm [shape: f32[16,32], index: 1, kind: input, shape index: {}]   ;;  %s462_s2 = inlined_call_operand.hbm [shape: bf16[32,32], index: 2, kind: input, shape index: {}]   ;;  %s463_s3 = inlined_call_operand.vmem [shape: f32[1,32], index: 3, kind: input, shape index: {}]   ;;  %s464_s4 = inlined_call_operand.hbm [shape: f32[16,32], index: 4, kind: output, shape index: {0}]   ;;  %s465_s5 = inlined_call_operand.hbm [shape: f32[16,32], index: 5, kind: output, shape index: {1}]  }
   0x1   :  { %12 = vsyncpa [#allocation6], 0 }
   0x2   :  { %13 = vsyncpa [#allocation4], 0 }
   0x3   :  { %14 = vsyncpa [#allocation10], 0  ;;  %s383_s18 = smov [#allocation5]   ;;  %s384_s20 = smov [#allocation2]  }
   0x4   :  { %s32_s19 = sshll.u32 %s383_s18, 4  ;;  %s20_s21 = sshll.u32 %s384_s20, 4  ;;  %s33_s19 = int_to_ptr.vmem [resolvable:$true] %s32_s19  ;;  %s21_s21 = int_to_ptr.vmem [resolvable:$true] %s20_s21 }
   0x5   :  { %s283_s22 = scalar_lea.vmem %s33_s19, 256  ;;  %p288_p1 = scmp.lt.s32.totalorder %s33_s19, %s33_s19 }
   0x6   :  { %p284_p0 = scmp.ne.s32.totalorder %s33_s19, %s283_s22  ;;  %p289_p2 = scmp.lt.s32.totalorder %s283_s22, %s283_s22 }
   0x8   :  { %p290_p3 = por %p289_p2, %p288_p1 }
   0xa   :  { %p291_p4 = pnand %p290_p3, %p284_p0 }
   0xc   :  { %294 = shalt.err (!%p291_p4)
}
   0xd   :  { %s385_s23 = smov 128   ;;  %s386_s24 = smov 8  }
   0xe   :  { %38 = dma.hbm_to_vmem [thread:$0]  %s461_s1, 256, %s33_s19, [#allocation6], %s385_s23, %s385_s23, %s386_s24  }
   0xf   :  { %s303_s27 = scalar_lea.vmem %s21_s21, 256  ;;  %p308_p6 = scmp.lt.s32.totalorder %s21_s21, %s21_s21 }
  0x10   :  { %p304_p5 = scmp.ne.s32.totalorder %s21_s21, %s303_s27  ;;  %p309_p7 = scmp.lt.s32.totalorder %s303_s27, %s303_s27 }
  0x12   :  { %p310_p8 = por %p309_p7, %p308_p6 }
  0x14   :  { %p311_p9 = pnand %p310_p8, %p304_p5 }
  0x16   :  { %314 = shalt.err (!%p311_p9)
}
  0x17   :  { %26 = dma.hbm_to_vmem [thread:$0]  %s460_s0, 256, %s21_s21, [#allocation3], %s385_s23, %s385_s23, %s386_s24  }
  0x18   :  { %s387_s30 = smov [#allocation7]  }
  0x19   :  { %s44_s6 = sshll.u32 %s387_s30, 4  ;;  %s45_s6 = int_to_ptr.vmem [resolvable:$true] %s44_s6 }
  0x1a   :  { %s323_s7 = scalar_lea.vmem %s45_s6, 256  ;;  %p328_p11 = scmp.lt.s32.totalorder %s45_s6, %s45_s6 }
  0x1b   :  { %p324_p10 = scmp.ne.s32.totalorder %s45_s6, %s323_s7  ;;  %p329_p12 = scmp.lt.s32.totalorder %s323_s7, %s323_s7 }
  0x1d   :  { %p330_p13 = por %p329_p12, %p328_p11 }
  0x1f   :  { %p331_p0 = pnand %p330_p13, %p324_p10 }
  0x21   :  { %334 = shalt.err (!%p331_p0)
}
  0x22   :  { %s388_s1 = smov 64   ;;  %s389_s8 = smov 4  }
  0x23   :  { %50 = dma.hbm_to_vmem [thread:$0]  %s462_s2, 256, %s45_s6, [#allocation6], %s388_s1, %s388_s1, %s389_s8  }
  0x24   :  { %375 = dma.done.wait [#allocation3], 256  }
  0x25   :  { %376 = vsyncadd [#allocation3], 4294967040 }
  0x26   :  { %377 = dma.done.wait [#allocation6], 512  }
  0x27   :  { %378 = vsyncadd [#allocation6], 4294966784  ;;  %v390_v0 = vmov 0.0   ;;  %vm391_vm0 = vmmov 0   ;;  %v265_v1 = vld [vmem:[#allocation7 + $0x8] sm:$0xff]   ;;  %v266_v2 = vld [vmem:[#allocation7] sm:$0xff]  }
  0x28   :  { %238 = vmatprep.subr.bf16.mxu0 %v390_v0  ;;  %246 = vmatprep.subr.bf16.mxu1 %v390_v0  ;;  %v63_v3 = vld [vmem:[#allocation2] sm:$0xff]  ;;  %v64_v4 = vld [vmem:[#allocation2 + $0x8] sm:$0xff]  ;;  %v65_v5 = vld [vmem:[#allocation5] sm:$0xff]  ;;  %vm96_vm1 = vcmask 261120   ;;  %s392_s11 = smov [#allocation9]  }
  0x29   :  { %242 = vmatprep.mubr.msk.bf16.mxu0 %vm391_vm0, %v390_v0  ;;  %250 = vmatprep.mubr.msk.bf16.mxu1 %vm391_vm0, %v390_v0  ;;  %v66_v6 = vld [vmem:[#allocation5 + $0x8] sm:$0xff]  ;;  %v67_v7 = vadd.f32 %v65_v5, %v63_v3  ;;  %v227_v13 = vld [vmem:[%s463_s3] ss:$0 sm:$0xff]  ;;  %s210_s12 = sshll.u32 %s392_s11, 4  ;;  %s393_s3 = smov [#allocation8]   ;;  %s211_s12 = int_to_ptr.vmem [resolvable:$true] %s210_s12 }
  0x2a   :  { %239 = vmatpush3.bf16.msra.mxu0 %v265_v1  ;;  %247 = vmatpush3.bf16.msra.mxu1 %v265_v1  ;;  %v68_v8 = vadd.f32 %v66_v6, %v64_v4  ;;  %v72_v10 = vpack.c.bf16 %v66_v6, %v65_v5  ;;  %s198_s13 = sshll.u32 %s393_s3, 4  ;;  %s335_s14 = scalar_lea.vmem %s211_s12, 256  ;;  %s199_s13 = int_to_ptr.vmem [resolvable:$true] %s198_s13 }
  0x2b   :  { %240 = vmatprep.subr.bf16.mxu0 %v390_v0  ;;  %248 = vmatprep.subr.bf16.mxu1 %v390_v0  ;;  %v69_v9 = vmul.f32 0.5, %v67_v7  ;;  %p336_p1 = scmp.ne.s32.totalorder %s211_s12, %s335_s14  ;;  %p340_p2 = scmp.lt.s32.totalorder %s211_s12, %s211_s12 }
  0x2c   :  { %v70_v11 = vmul.f32 0.5, %v68_v8  ;;  %p341_p3 = scmp.lt.s32.totalorder %s335_s14, %s335_s14 }
  0x2e   :  { %241 = vmatpush3.bf16.msra.mxu0 %v266_v2  ;;  %249 = vmatpush3.bf16.msra.mxu1 %v266_v2  ;;  %v71_v12 = vpack.c.bf16 %v70_v11, %v69_v9  ;;  %p342_p4 = por %p341_p3, %p340_p2 }
  0x30   :  { %p343_p5 = pnand %p342_p4, %p336_p1 }
  0x31   :  { %251 = vmatmul.mubr.msk.bf16.vlgmr.msra.gmra.mxu1 %vm96_vm1, %v72_v10  ;;  %243 = vmatmul.mubr.msk.bf16.vlgmr.msra.gmra.mxu0 %vm96_vm1, %v71_v12 }
  0xf1   :  { %v178_v14 = vpop.f32.mrf.mxu1  ;;  %v134_v15 = vpop.f32.mrf.mxu0 }
  0xf2   :  { %v179_v16 = vadd.f32 %v227_v13, %v178_v14  ;;  %v135_v17 = vadd.f32 %v227_v13, %v134_v15 }
  0xf3   :  { %v252_v18 = vpop.f32.mrf.mxu1  ;;  %v244_v19 = vpop.f32.mrf.mxu0 }
  0xf4   :  { %267 = vtanh.f32 %v179_v16 }
  0xf5   :  { %269 = vtanh.f32 %v135_v17  ;;  %v181_v20 = vpop.f32.mrf.mxu1  ;;  %v137_v21 = vpop.f32.mrf.mxu0 }
  0xf6   :  { %v182_v22 = vadd.f32 %v227_v13, %v181_v20  ;;  %v138_v23 = vadd.f32 %v227_v13, %v137_v21 }
  0xf7   :  { %v253_v24 = vpop.f32.mrf.mxu1  ;;  %v245_v25 = vpop.f32.mrf.mxu0 }
  0xf8   :  { %271 = vtanh.f32 %v182_v22 }
  0xf9   :  { %273 = vtanh.f32 %v138_v23 }
 0x101   :  { %v268_v26 = vpop.eup %267 }
 0x102   :  { %v270_v27 = vpop.eup %269  ;;  %191 = vst.msk [vmem:[#allocation9] sm:$0xff] %vm96_vm1, %v268_v26 }
 0x103   :  { %187 = vst.msk [vmem:[#allocation8] sm:$0xff] %vm96_vm1, %v270_v27 }
 0x105   :  { %v272_v28 = vpop.eup %271 }
 0x106   :  { %v274_v29 = vpop.eup %273  ;;  %192 = vst.msk [vmem:[#allocation9 + $0x8] sm:$0xff] %vm96_vm1, %v272_v28 }
 0x107   :  { %188 = vst.msk [vmem:[#allocation8 + $0x8] sm:$0xff] %vm96_vm1, %v274_v29 }
 0x108   :  { %346 = shalt.err (!%p343_p5)
}
 0x109   :  { %216 = dma.vmem_to_hbm [thread:$0]  %s211_s12, 256, %s465_s5, [#allocation10], %s385_s23, %s385_s23, %s386_s24  }
 0x10a   :  { %s355_s17 = scalar_lea.vmem %s199_s13, 256  ;;  %p360_p7 = scmp.lt.s32.totalorder %s199_s13, %s199_s13 }
 0x10b   :  { %p356_p6 = scmp.ne.s32.totalorder %s199_s13, %s355_s17  ;;  %p361_p8 = scmp.lt.s32.totalorder %s355_s17, %s355_s17 }
 0x10d   :  { %p362_p9 = por %p361_p8, %p360_p7 }
 0x10f   :  { %p363_p10 = pnand %p362_p9, %p356_p6 }
 0x111   :  { %366 = shalt.err (!%p363_p10)
}
 0x112   :  { %204 = dma.vmem_to_hbm [thread:$0]  %s199_s13, 256, %s464_s4, [#allocation4], %s385_s23, %s385_s23, %s386_s24  }
 0x113   :  { %379 = dma.done.wait [#allocation4], 256  }
 0x114   :  { %380 = vsyncadd [#allocation4], 4294967040 }
 0x115   :  { %381 = dma.done.wait [#allocation10], 256  }
 0x116   :  { %382 = vsyncadd [#allocation10], 4294967040 }
 0x117   :  { %223 = vsyncpa [#allocation3], 1 }
 0x118   :  { %224 = vsyncpa [#allocation6], 1 }
 0x119   :  { %225 = vsyncpa [#allocation4], 1 }
 0x11a   :  { %226 = vsyncpa [#allocation10], 1 }

</bundles_post_ra>
